<compile_context>
chip_gen: v7x
topology: tpu7x:2x2x1
jax: 0.10.0
libtpu: 0.0.40
codegen_flags: <defaults>
</compile_context>

<pallas_src>
import jax
import jax.numpy as jnp
from jax.experimental import pallas as pl
from jax.experimental.pallas import tpu as pltpu

BN_EPS = 1e-5
LANE = 128          # feature axes padded to the TPU lane width
SUBLANE = 8
MAX_TILE_ROWS = 512  # upper bound; actual tile_rows derived from the VMEM budget
MAX_TILE_COLS = 512  # weight output-column block width (lanes)


def _round_up(x, m):
    return ((x + m - 1) // m) * m


def _pad2d(a, rows, cols):
    pr, pc = rows - a.shape[0], cols - a.shape[1]
    if pr == 0 and pc == 0:
        return a
    return jnp.pad(a, ((0, pr), (0, pc)))


def _pick_tile_cols(d_out_pad, max_cols=MAX_TILE_COLS):
    """Largest multiple of LANE <= max_cols that divides d_out_pad."""
    best = LANE
    c = LANE
    while c <= min(max_cols, d_out_pad):
        if d_out_pad % c == 0:
            best = c
        c += LANE
    return best


def _vmem_limit_bytes():
    """Per-generation VMEM limit (conservative fallback = v7x 64 MiB per TC)."""
    cap = None
    try:
        info = pltpu.get_tpu_info()
        cap = getattr(info, "vmem_capacity_bytes", None)
    except Exception:
        cap = None
    if not cap or cap <= 0:
        cap = 64 * 1024 * 1024
    return int(min(cap * 0.8, 112 * 1024 * 1024))


def _max_rows_for_layer(d_in_pad, tile_cols, sz_x, sz_out, sz_w, budget):
    """Biggest row tile whose double-buffered tiles + resident weight block fit."""
    fixed = 2 * d_in_pad * tile_cols * sz_w + 8 * (d_in_pad + tile_cols) * 4
    per_row = (2 * d_in_pad * sz_x + 2 * tile_cols * sz_out
               + 4 * d_in_pad + 4 * tile_cols)       # + f32 in-kernel temporaries
    avail = budget - fixed
    if avail <= per_row * SUBLANE:
        return SUBLANE
    return (avail // per_row) // SUBLANE * SUBLANE


# ---------------------------------------------------------------------------
# Kernels
# ---------------------------------------------------------------------------
def _make_hidden_kernel(*, normalize_input, n_rows, tile_rows, n_row_tiles,
                        compute_dtype):
    """Fused [scale/shift(prev BN)+ReLU] -> matmul+bias -> streaming BN stats."""
    has_partial = (n_rows % tile_rows) != 0
    n_last = n_rows - (n_row_tiles - 1) * tile_rows   # valid rows in last tile

    def kernel(*refs):
        if normalize_input:
            (x_ref, scale_ref, shift_ref, w_ref, b_ref,
             h_ref, mean_ref, rstd_ref, mean_sc, m2_sc) = refs
        else:
            (x_ref, w_ref, b_ref,
             h_ref, mean_ref, rstd_ref, mean_sc, m2_sc) = refs

        i = pl.program_id(1)               # row tile (inner, reduction axis)
        last = pl.num_programs(1) - 1

        @pl.when(i == 0)
        def _init():
            mean_sc[...] = jnp.zeros_like(mean_sc)
            m2_sc[...] = jnp.zeros_like(m2_sc)

        xin = x_ref[...].astype(jnp.float32)
        if normalize_input:
            # Fused BN(prev layer, training stats) + ReLU prologue; scale/shift
            # were hoisted to the wrapper (computed once per layer, in f32).
            xin = jnp.maximum(xin * scale_ref[...] + shift_ref[...], 0.0)

        # MXU matmul: bf16 (default) or f32 inputs, f32 accumulation.
        h = jnp.dot(xin.astype(compute_dtype), w_ref[...],
                    preferred_element_type=jnp.float32)
        h = h + b_ref[...]

        def merge_stats(n_b, valid):
            # Chan et al. parallel (mean, M2) merge -- avoids E[x^2]-E[x]^2.
            i_f = i.astype(jnp.float32)
            n_a = i_f * tile_rows                 # valid rows in prior tiles
            n_b_f = jnp.float32(n_b)
            n_ab = n_a + n_b_f
            hm = h if valid is None else h * valid
            mean_b = jnp.sum(hm, axis=0, keepdims=True) * (1.0 / n_b)
            d = h - mean_b
            if valid is not None:
                d = d * valid
            m2_b = jnp.sum(d * d, axis=0, keepdims=True)
            delta = mean_b - mean_sc[...]
            mean_sc[...] = mean_sc[...] + delta * (n_b_f / n_ab)
            m2_sc[...] = m2_sc[...] + m2_b + delta * delta * (n_a * n_b_f / n_ab)

        if has_partial:
            # Unmasked fast path for full tiles; mask only the last tile.
            @pl.when(i < last)
            def _full():
                merge_stats(tile_rows, None)

            @pl.when(i == last)
            def _partial():
                row = jax.lax.broadcasted_iota(jnp.int32, (tile_rows, 1), 0)
                valid = (row < n_last).astype(jnp.float32)
                merge_stats(n_last, valid)
        else:
            merge_stats(tile_rows, None)

        # Pre-BN activation back to HBM; normalization fused into next layer.
        h_ref[...] = h.astype(h_ref.dtype)

        @pl.when(i == last)
        def _finalize():
            var = m2_sc[...] * (1.0 / n_rows)     # biased var (BN training mode)
            mean_ref[...] = mean_sc[...]
            rstd_ref[...] = jax.lax.rsqrt(var + BN_EPS)

    return kernel


def _make_output_kernel(*, normalize_input, compute_dtype):
    """Fused [scale/shift(prev BN)+ReLU] -> final matmul+bias."""

    def kernel(*refs):
        if normalize_input:
            (x_ref, scale_ref, shift_ref, w_ref, b_ref, o_ref) = refs
        else:
            (x_ref, w_ref, b_ref, o_ref) = refs

        xin = x_ref[...].astype(jnp.float32)
        if normalize_input:
            xin = jnp.maximum(xin * scale_ref[...] + shift_ref[...], 0.0)

        h = jnp.dot(xin.astype(compute_dtype), w_ref[...],
                    preferred_element_type=jnp.float32)
        o_ref[...] = (h + b_ref[...]).astype(o_ref.dtype)

    return kernel


# ---------------------------------------------------------------------------
# pallas_call wrappers
# ---------------------------------------------------------------------------
def _hidden_layer(x_pad, prev_ss, w_pad, b_pad, *, n_rows, tile_rows, tile_cols,
                  compute_dtype, h_dtype, vmem_limit):
    n_pad, d_in_pad = x_pad.shape
    d_out_pad = w_pad.shape[1]
    n_row_tiles = n_pad // tile_rows
    n_col_tiles = d_out_pad // tile_cols
    normalize_input = prev_ss is not None

    row_in = pl.BlockSpec((tile_rows, d_in_pad), lambda j, i: (i, 0))
    vec_in = pl.BlockSpec((1, d_in_pad), lambda j, i: (0, 0))   # grid-invariant
    w_spec = pl.BlockSpec((d_in_pad, tile_cols), lambda j, i: (0, j))
    b_spec = pl.BlockSpec((1, tile_cols), lambda j, i: (0, j))
    h_spec = pl.BlockSpec((tile_rows, tile_cols), lambda j, i: (i, j))
    stat_spec = pl.BlockSpec((1, tile_cols), lambda j, i: (0, j))

    if normalize_input:
        scale, shift = prev_ss
        in_specs = [row_in, vec_in, vec_in, w_spec, b_spec]
        args = (x_pad, scale, shift, w_pad, b_pad)
    else:
        in_specs = [row_in, w_spec, b_spec]
        args = (x_pad, w_pad, b_pad)

    kernel = _make_hidden_kernel(normalize_input=normalize_input, n_rows=n_rows,
                                 tile_rows=tile_rows, n_row_tiles=n_row_tiles,
                                 compute_dtype=compute_dtype)

    flops = 2 * n_pad * d_in_pad * d_out_pad
    bytes_accessed = int(n_col_tiles * x_pad.size * x_pad.dtype.itemsize
                         + w_pad.size * w_pad.dtype.itemsize
                         + n_pad * d_out_pad * jnp.dtype(h_dtype).itemsize)

    h, mean, rstd = pl.pallas_call(
        kernel,
        out_shape=(jax.ShapeDtypeStruct((n_pad, d_out_pad), h_dtype),
                   jax.ShapeDtypeStruct((1, d_out_pad), jnp.float32),
                   jax.ShapeDtypeStruct((1, d_out_pad), jnp.float32)),
        grid_spec=pltpu.PrefetchScalarGridSpec(
            num_scalar_prefetch=0,
            grid=(n_col_tiles, n_row_tiles),
            in_specs=in_specs,
            out_specs=(h_spec, stat_spec, stat_spec),
            scratch_shapes=[pltpu.VMEM((1, tile_cols), jnp.float32),
                            pltpu.VMEM((1, tile_cols), jnp.float32)]),
        compiler_params=pltpu.CompilerParams(
            # Column blocks independent (v7x megacore); rows accumulate stats.
            dimension_semantics=("parallel", "arbitrary"),
            vmem_limit_bytes=vmem_limit),
        cost_estimate=pl.CostEstimate(flops=flops, transcendentals=int(d_out_pad),
                                      bytes_accessed=bytes_accessed),
    )(*args)
    return h, mean, rstd


def _output_layer(x_pad, prev_ss, w_pad, b_pad, *, tile_rows, tile_cols,
                  compute_dtype, vmem_limit):
    n_pad, d_in_pad = x_pad.shape
    d_out_pad = w_pad.shape[1]
    n_row_tiles = n_pad // tile_rows
    n_col_tiles = d_out_pad // tile_cols
    normalize_input = prev_ss is not None

    row_in = pl.BlockSpec((tile_rows, d_in_pad), lambda j, i: (i, 0))
    vec_in = pl.BlockSpec((1, d_in_pad), lambda j, i: (0, 0))
    w_spec = pl.BlockSpec((d_in_pad, tile_cols), lambda j, i: (0, j))
    b_spec = pl.BlockSpec((1, tile_cols), lambda j, i: (0, j))
    o_spec = pl.BlockSpec((tile_rows, tile_cols), lambda j, i: (i, j))

    if normalize_input:
        scale, shift = prev_ss
        in_specs = [row_in, vec_in, vec_in, w_spec, b_spec]
        args = (x_pad, scale, shift, w_pad, b_pad)
    else:
        in_specs = [row_in, w_spec, b_spec]
        args = (x_pad, w_pad, b_pad)

    kernel = _make_output_kernel(normalize_input=normalize_input,
                                 compute_dtype=compute_dtype)

    flops = 2 * n_pad * d_in_pad * d_out_pad
    bytes_accessed = int(n_col_tiles * x_pad.size * x_pad.dtype.itemsize
                         + w_pad.size * w_pad.dtype.itemsize
                         + n_pad * d_out_pad * 4)

    return pl.pallas_call(
        kernel,
        out_shape=jax.ShapeDtypeStruct((n_pad, d_out_pad), jnp.float32),
        grid_spec=pltpu.PrefetchScalarGridSpec(
            num_scalar_prefetch=0,
            grid=(n_col_tiles, n_row_tiles),
            in_specs=in_specs,
            out_specs=o_spec),
        compiler_params=pltpu.CompilerParams(
            dimension_semantics=("parallel", "parallel"),   # fully independent
            vmem_limit_bytes=vmem_limit),
        cost_estimate=pl.CostEstimate(flops=flops, transcendentals=0,
                                      bytes_accessed=bytes_accessed),
    )(*args)


# ---------------------------------------------------------------------------
# Parameter construction (mimics nn.Linear / nn.BatchNorm1d init)
# ---------------------------------------------------------------------------
def init_mlp_params(key, num_layers, input_dim, hidden_dim, output_dim):
    assert num_layers >= 1
    if num_layers == 1:
        dims = [input_dim, output_dim]
    else:
        dims = [input_dim] + [hidden_dim] * (num_layers - 1) + [output_dim]
    params = []
    for layer in range(num_layers):
        d_in, d_out = dims[layer], dims[layer + 1]
        key, kw, kb = jax.random.split(key, 3)
        bound = 1.0 / jnp.sqrt(jnp.float32(d_in))
        # weight stored already transposed: [d_in, d_out] (PyTorch keeps [d_out, d_in])
        w_t = jax.random.uniform(kw, (d_in, d_out), jnp.float32, -bound, bound)
        b = jax.random.uniform(kb, (1, d_out), jnp.float32, -bound, bound)
        if layer < num_layers - 1:
            params.append(dict(w_t=w_t, b=b,
                               gamma=jnp.ones((1, d_out), jnp.float32),
                               beta=jnp.zeros((1, d_out), jnp.float32)))
        else:
            params.append(dict(w_t=w_t, b=b))
    return params


# ---------------------------------------------------------------------------
# Forward pass (matches MLP.forward)
# ---------------------------------------------------------------------------
def mlp_forward(params, x, *, compute_dtype=jnp.bfloat16, tile_rows=None,
                activation_dtype=None):
    """compute_dtype=bf16 is the fast path (MXU-native); f32 is for validation."""
    assert x.ndim == 3, "expects [B, S, D] input (flatten(0,1) in the module)"
    b0, s0, d_in = x.shape
    n = b0 * s0
    num_layers = len(params)
    d_out_final = params[-1]["w_t"].shape[1]

    # Inter-layer (pre-BN) activation storage dtype: bf16 halves HBM traffic;
    # f32 keeps the validation path numerically faithful to the reference.
    if activation_dtype is None:
        h_dtype = jnp.float32 if compute_dtype == jnp.float32 else jnp.bfloat16
    else:
        h_dtype = activation_dtype

    vmem_limit = _vmem_limit_bytes()
    budget = int(vmem_limit * 0.7)
    sz_w = jnp.dtype(compute_dtype).itemsize
    sz_h = jnp.dtype(h_dtype).itemsize

    dims = [d_in] + [p["w_t"].shape[1] for p in params]
    d_pads = [_round_up(d, LANE) for d in dims]
    tile_cols_l = [_pick_tile_cols(d_pads[l + 1]) for l in range(num_layers)]

    if tile_rows is None:
        # Per-generation row-tile derivation: largest tile whose double-buffered
        # activation tiles + resident weight column block fit the VMEM budget.
        tile_rows = MAX_TILE_ROWS
        for l in range(num_layers):
            sz_x = 4 if l == 0 else sz_h
            sz_out = sz_h if l < num_layers - 1 else 4
            tile_rows = min(tile_rows,
                            _max_rows_for_layer(d_pads[l], tile_cols_l[l],
                                                sz_x, sz_out, sz_w, budget))
        tile_rows = max(SUBLANE, tile_rows)
    tile_rows = max(SUBLANE, _round_up(tile_rows, SUBLANE))
    tile_rows = min(tile_rows, _round_up(n, SUBLANE))
    n_pad = _round_up(n, tile_rows)

    # Pad rows to the tile and features to the lane width (lane-dense tiles).
    # Padded weight rows/cols and gamma/beta are zero, so results are unchanged
    # (padded lanes get scale=0, shift=0 in the fused BN prologue).
    h = _pad2d(x.reshape(n, d_in).astype(jnp.float32), n_pad, d_pads[0])

    prev_ss = None
    y = None
    for layer, p in enumerate(params):
        w_pad = _pad2d(p["w_t"], d_pads[layer], d_pads[layer + 1]).astype(compute_dtype)
        b_pad = _pad2d(p["b"], 1, d_pads[layer + 1])
        if layer < num_layers - 1:
            h, mean, rstd = _hidden_layer(
                h, prev_ss, w_pad, b_pad, n_rows=n, tile_rows=tile_rows,
                tile_cols=tile_cols_l[layer], compute_dtype=compute_dtype,
                h_dtype=h_dtype, vmem_limit=vmem_limit)
            gamma_pad = _pad2d(p["gamma"], 1, d_pads[layer + 1])
            beta_pad = _pad2d(p["beta"], 1, d_pads[layer + 1])
            # Hoisted BN scale/shift: once per layer on (1, D) vectors, in f32.
            scale = rstd * gamma_pad
            shift = beta_pad - mean * scale
            prev_ss = (scale, shift)
        else:
            y = _output_layer(h, prev_ss, w_pad, b_pad, tile_rows=tile_rows,
                              tile_cols=tile_cols_l[layer],
                              compute_dtype=compute_dtype, vmem_limit=vmem_limit)

    y = y[:n, :d_out_final]
    return y.reshape(b0, s0, d_out_final).astype(x.dtype)


# ---------------------------------------------------------------------------
# Pure-JAX reference
# ---------------------------------------------------------------------------
def mlp_reference(params, x):
    b0, s0 = x.shape[0], x.shape[1]
    h = x.reshape(b0 * s0, x.shape[-1]).astype(jnp.float32)
    for p in params[:-1]:
        h = h @ p["w_t"] + p["b"]
        mean = h.mean(axis=0, keepdims=True)
        var = ((h - mean) ** 2).mean(axis=0, keepdims=True)
        h = (h - mean) / jnp.sqrt(var + BN_EPS)
        h = h * p["gamma"] + p["beta"]
        h = jnp.maximum(h, 0.0)
    p = params[-1]
    h = h @ p["w_t"] + p["b"]
    return h.reshape(b0, s0, -1)


if __name__ == "__main__":
    B, S = 2, 8
    NUM_LAYERS = 3
    INPUT_DIM, HIDDEN_DIM, OUTPUT_DIM = 16, 32, 8

    key = jax.random.PRNGKey(0)
    key, kx = jax.random.split(key)
    x = jax.random.normal(kx, (B, S, INPUT_DIM), jnp.float32)
    params = init_mlp_params(key, NUM_LAYERS, INPUT_DIM, HIDDEN_DIM, OUTPUT_DIM)

    ref = mlp_reference(params, x)

    # 1) f32 validation path: numerically faithful to the PyTorch module.
    out_f32 = jax.block_until_ready(mlp_forward(params, x, compute_dtype=jnp.float32))
    assert out_f32.shape == (B, S, OUTPUT_DIM), out_f32.shape
    assert jnp.allclose(out_f32, ref, atol=1e-4, rtol=1e-4), "f32 mismatch vs reference"

    # 2) bf16 fast path (default): bf16 MXU inputs + bf16 inter-layer activations,
    #    f32 accumulation / BN statistics.  Looser tolerance.
    out_bf16 = jax.block_until_ready(mlp_forward(params, x))
    assert out_bf16.shape == (B, S, OUTPUT_DIM), out_bf16.shape
    assert jnp.allclose(out_bf16, ref, atol=1e-1, rtol=5e-2), "bf16 mismatch vs reference"

    # 3) num_layers == 1 (pure linear) path.
    key, k1 = jax.random.split(key)
    params1 = init_mlp_params(k1, 1, INPUT_DIM, HIDDEN_DIM, OUTPUT_DIM)
    ref1 = mlp_reference(params1, x)
    out1 = jax.block_until_ready(mlp_forward(params1, x, compute_dtype=jnp.float32))
    assert out1.shape == (B, S, OUTPUT_DIM), out1.shape
    assert jnp.allclose(out1, ref1, atol=1e-4, rtol=1e-4), "linear mismatch vs reference"

    print("KERNEL_OK")
</pallas_src>

<mosaic_0001>
module attributes {stable_mosaic.version = 11 : i64} {
  func.func @kernel(%arg0: i32, %arg1: i32, %arg2: memref<16x128xf32, #tpu.memory_space<vmem>>, %arg3: memref<128x128xf32, #tpu.memory_space<vmem>>, %arg4: memref<1x128xf32, #tpu.memory_space<vmem>>, %arg5: memref<16x128xf32, #tpu.memory_space<vmem>>, %arg6: memref<1x128xf32, #tpu.memory_space<vmem>>, %arg7: memref<1x128xf32, #tpu.memory_space<vmem>>, %arg8: memref<1x128xf32, #tpu.memory_space<vmem>>, %arg9: memref<1x128xf32, #tpu.memory_space<vmem>>) attributes {dimension_semantics = [#tpu.dimension_semantics<parallel>, #tpu.dimension_semantics<arbitrary>], iteration_bounds = array<i64: 1, 1>, scalar_prefetch = 0 : i64, scratch_operands = 2 : i64, tpu.core_type = #tpu.core_type<tc>, window_params = [{transform_indices = @transform_0, window_bounds = array<i64: 16, 128>}, {transform_indices = @transform_1, window_bounds = array<i64: 128, 128>}, {transform_indices = @transform_2, window_bounds = array<i64: 1, 128>}, {transform_indices = @transform_3, window_bounds = array<i64: 16, 128>}, {transform_indices = @transform_4, window_bounds = array<i64: 1, 128>}, {transform_indices = @transform_5, window_bounds = array<i64: 1, 128>}]} {
    %c0_i32 = arith.constant 0 : i32
    %0 = arith.cmpi eq, %arg1, %c0_i32 : i32
    %1 = arith.extui %0 : i1 to i32
    %c0_i32_0 = arith.constant 0 : i32
    %2 = arith.cmpi ne, %1, %c0_i32_0 : i32
    scf.if %2 {
      %cst_27 = arith.constant 0.000000e+00 : f32
      %42 = vector.broadcast %cst_27 : f32 to vector<1x128xf32>
      %c0_28 = arith.constant 0 : index
      %c0_29 = arith.constant 0 : index
      %43 = vector.load %arg8[%c0_28, %c0_29] : memref<1x128xf32, #tpu.memory_space<vmem>>, vector<1x128xf32>
      tpu.vector_store %arg8[%c0_28, %c0_29], %42 {strides = array<i32>} : memref<1x128xf32, #tpu.memory_space<vmem>>, vector<1x128xf32>,
      %cst_30 = arith.constant 0.000000e+00 : f32
      %44 = vector.broadcast %cst_30 : f32 to vector<1x128xf32>
      %c0_31 = arith.constant 0 : index
      %c0_32 = arith.constant 0 : index
      %45 = vector.load %arg9[%c0_31, %c0_32] : memref<1x128xf32, #tpu.memory_space<vmem>>, vector<1x128xf32>
      tpu.vector_store %arg9[%c0_31, %c0_32], %44 {strides = array<i32>} : memref<1x128xf32, #tpu.memory_space<vmem>>, vector<1x128xf32>,
    } else {
    }
    %c0 = arith.constant 0 : index
    %c0_1 = arith.constant 0 : index
    %3 = vector.load %arg2[%c0, %c0_1] : memref<16x128xf32, #tpu.memory_space<vmem>>, vector<16x128xf32>
    %c0_2 = arith.constant 0 : index
    %c0_3 = arith.constant 0 : index
    %4 = vector.load %arg3[%c0_2, %c0_3] : memref<128x128xf32, #tpu.memory_space<vmem>>, vector<128x128xf32>
    %cst = arith.constant dense<0.000000e+00> : vector<16x128xf32>
    %5 = tpu.matmul %3, %4, %cst {dimension_numbers = #tpu.dot_dimension_numbers<[1], [0], [0], [1], [0, 0, 1, 1], [], []>} : vector<16x128xf32>, vector<128x128xf32>, vector<16x128xf32> -> vector<16x128xf32>
    %c0_4 = arith.constant 0 : index
    %c0_5 = arith.constant 0 : index
    %6 = vector.load %arg4[%c0_4, %c0_5] : memref<1x128xf32, #tpu.memory_space<vmem>>, vector<1x128xf32>
    %7 = vector.broadcast %6 : vector<1x128xf32> to vector<16x128xf32>
    %8 = arith.addf %5, %7 : vector<16x128xf32>
    %9 = arith.sitofp %arg1 : i32 to f32
    %cst_6 = arith.constant 1.600000e+01 : f32
    %10 = arith.mulf %9, %cst_6 : f32
    %cst_7 = arith.constant 1.600000e+01 : f32
    %11 = arith.addf %10, %cst_7 : f32
    %cst_8 = arith.constant dense<0.000000e+00> : vector<128xf32>
    %12 = vector.multi_reduction <add>, %8, %cst_8 [0] : vector<16x128xf32> to vector<128xf32>
    %13 = vector.shape_cast %12 : vector<128xf32> to vector<1x128xf32>
    %cst_9 = arith.constant 6.250000e-02 : f32
    %14 = vector.broadcast %cst_9 : f32 to vector<1x128xf32>
    %15 = arith.mulf %13, %14 : vector<1x128xf32>
    %16 = vector.broadcast %15 : vector<1x128xf32> to vector<16x128xf32>
    %17 = arith.subf %8, %16 : vector<16x128xf32>
    %18 = arith.mulf %17, %17 : vector<16x128xf32>
    %cst_10 = arith.constant dense<0.000000e+00> : vector<128xf32>
    %19 = vector.multi_reduction <add>, %18, %cst_10 [0] : vector<16x128xf32> to vector<128xf32>
    %20 = vector.shape_cast %19 : vector<128xf32> to vector<1x128xf32>
    %c0_11 = arith.constant 0 : index
    %c0_12 = arith.constant 0 : index
    %21 = vector.load %arg8[%c0_11, %c0_12] : memref<1x128xf32, #tpu.memory_space<vmem>>, vector<1x128xf32>
    %22 = arith.subf %15, %21 : vector<1x128xf32>
    %c0_13 = arith.constant 0 : index
    %c0_14 = arith.constant 0 : index
    %23 = vector.load %arg8[%c0_13, %c0_14] : memref<1x128xf32, #tpu.memory_space<vmem>>, vector<1x128xf32>
    %cst_15 = arith.constant 1.600000e+01 : f32
    %24 = arith.divf %cst_15, %11 : f32
    %25 = vector.broadcast %24 : f32 to vector<1x128xf32>
    %26 = arith.mulf %22, %25 : vector<1x128xf32>
    %27 = arith.addf %23, %26 : vector<1x128xf32>
    %c0_16 = arith.constant 0 : index
    %c0_17 = arith.constant 0 : index
    %28 = vector.load %arg8[%c0_16, %c0_17] : memref<1x128xf32, #tpu.memory_space<vmem>>, vector<1x128xf32>
    tpu.vector_store %arg8[%c0_16, %c0_17], %27 {strides = array<i32>} : memref<1x128xf32, #tpu.memory_space<vmem>>, vector<1x128xf32>,
    %c0_18 = arith.constant 0 : index
    %c0_19 = arith.constant 0 : index
    %29 = vector.load %arg9[%c0_18, %c0_19] : memref<1x128xf32, #tpu.memory_space<vmem>>, vector<1x128xf32>
    %30 = arith.addf %29, %20 : vector<1x128xf32>
    %31 = arith.mulf %22, %22 : vector<1x128xf32>
    %cst_20 = arith.constant 1.600000e+01 : f32
    %32 = arith.mulf %10, %cst_20 : f32
    %33 = arith.divf %32, %11 : f32
    %34 = vector.broadcast %33 : f32 to vector<1x128xf32>
    %35 = arith.mulf %31, %34 : vector<1x128xf32>
    %36 = arith.addf %30, %35 : vector<1x128xf32>
    %c0_21 = arith.constant 0 : index
    %c0_22 = arith.constant 0 : index
    %37 = vector.load %arg9[%c0_21, %c0_22] : memref<1x128xf32, #tpu.memory_space<vmem>>, vector<1x128xf32>
    tpu.vector_store %arg9[%c0_21, %c0_22], %36 {strides = array<i32>} : memref<1x128xf32, #tpu.memory_space<vmem>>, vector<1x128xf32>,
    %c0_23 = arith.constant 0 : index
    %c0_24 = arith.constant 0 : index
    %38 = vector.load %arg5[%c0_23, %c0_24] : memref<16x128xf32, #tpu.memory_space<vmem>>, vector<16x128xf32>
    tpu.vector_store %arg5[%c0_23, %c0_24], %8 {strides = array<i32>} : memref<16x128xf32, #tpu.memory_space<vmem>>, vector<16x128xf32>,
    %c0_i32_25 = arith.constant 0 : i32
    %39 = arith.cmpi eq, %arg1, %c0_i32_25 : i32
    %40 = arith.extui %39 : i1 to i32
    %c0_i32_26 = arith.constant 0 : i32
    %41 = arith.cmpi ne, %40, %c0_i32_26 : i32
    scf.if %41 {
      %c0_27 = arith.constant 0 : index
      %c0_28 = arith.constant 0 : index
      %42 = vector.load %arg9[%c0_27, %c0_28] : memref<1x128xf32, #tpu.memory_space<vmem>>, vector<1x128xf32>
      %cst_29 = arith.constant 6.250000e-02 : f32
      %43 = vector.broadcast %cst_29 : f32 to vector<1x128xf32>
      %44 = arith.mulf %42, %43 : vector<1x128xf32>
      %c0_30 = arith.constant 0 : index
      %c0_31 = arith.constant 0 : index
      %45 = vector.load %arg8[%c0_30, %c0_31] : memref<1x128xf32, #tpu.memory_space<vmem>>, vector<1x128xf32>
      %c0_32 = arith.constant 0 : index
      %c0_33 = arith.constant 0 : index
      %46 = vector.load %arg6[%c0_32, %c0_33] : memref<1x128xf32, #tpu.memory_space<vmem>>, vector<1x128xf32>
      tpu.vector_store %arg6[%c0_32, %c0_33], %45 {strides = array<i32>} : memref<1x128xf32, #tpu.memory_space<vmem>>, vector<1x128xf32>,
      %cst_34 = arith.constant 9.99999974E-6 : f32
      %47 = vector.broadcast %cst_34 : f32 to vector<1x128xf32>
      %48 = arith.addf %44, %47 : vector<1x128xf32>
      %49 = math.rsqrt %48 : vector<1x128xf32>
      %c0_35 = arith.constant 0 : index
      %c0_36 = arith.constant 0 : index
      %50 = vector.load %arg7[%c0_35, %c0_36] : memref<1x128xf32, #tpu.memory_space<vmem>>, vector<1x128xf32>
      tpu.vector_store %arg7[%c0_35, %c0_36], %49 {strides = array<i32>} : memref<1x128xf32, #tpu.memory_space<vmem>>, vector<1x128xf32>,
    } else {
    }
    return
  }
  func.func @transform_0(%arg0: i32, %arg1: i32) -> (i32, i32) {
    %c0_i32 = arith.constant 0 : i32
    %c0_i32_0 = arith.constant 0 : i32
    return %arg1, %c0_i32 : i32, i32
  }
  func.func @transform_1(%arg0: i32, %arg1: i32) -> (i32, i32) {
    %c0_i32 = arith.constant 0 : i32
    %c0_i32_0 = arith.constant 0 : i32
    return %c0_i32, %arg0 : i32, i32
  }
  func.func @transform_2(%arg0: i32, %arg1: i32) -> (i32, i32) {
    %c0_i32 = arith.constant 0 : i32
    %c0_i32_0 = arith.constant 0 : i32
    return %c0_i32, %arg0 : i32, i32
  }
  func.func @transform_3(%arg0: i32, %arg1: i32) -> (i32, i32) {
    %c0_i32 = arith.constant 0 : i32
    return %arg1, %arg0 : i32, i32
  }
  func.func @transform_4(%arg0: i32, %arg1: i32) -> (i32, i32) {
    %c0_i32 = arith.constant 0 : i32
    %c0_i32_0 = arith.constant 0 : i32
    return %c0_i32, %arg0 : i32, i32
  }
  func.func @transform_5(%arg0: i32, %arg1: i32) -> (i32, i32) {
    %c0_i32 = arith.constant 0 : i32
    %c0_i32_0 = arith.constant 0 : i32
    return %c0_i32, %arg0 : i32, i32
  }
}

</mosaic_0001>

<bundles_post_ra>
// kernel: tpu_custom_call.1
= control target key start
LH: loop header
LB: loop body
LE: loop exit
PB: predicated region body
PF: predicated region fallthrough
CT: control target
= control target key end

     0   :  { %11 = vsyncpa [#allocation5], 0  ;;  %s578_s0 = inlined_call_operand.hbm [shape: f32[16,128], index: 0, kind: input, shape index: {}]   ;;  %s579_s1 = inlined_call_operand.hbm [shape: f32[128,128], index: 1, kind: input, shape index: {}]   ;;  %s580_s2 = inlined_call_operand.vmem [shape: f32[1,128], index: 2, kind: input, shape index: {}]   ;;  %s581_s3 = inlined_call_operand.hbm [shape: f32[16,128], index: 3, kind: output, shape index: {0}]   ;;  %s582_s4 = inlined_call_operand.hbm [shape: f32[1,128], index: 4, kind: output, shape index: {1}]   ;;  %s583_s5 = inlined_call_operand.hbm [shape: f32[1,128], index: 5, kind: output, shape index: {2}]  }
   0x1   :  { %12 = vsyncpa [#allocation8], 0 }
   0x2   :  { %13 = vsyncpa [#allocation6], 0 }
   0x3   :  { %14 = vsyncpa [#allocation11], 0  ;;  %s468_s18 = smov [#allocation4]   ;;  %s350_s22 = scalar_lea.hbm %s578_s0, 256 }
   0x4   :  { %s20_s19 = sshll.u32 %s468_s18, 4  ;;  %p351_p0 = scmp.ne.s32.totalorder %s578_s0, %s350_s22  ;;  %s21_s19 = int_to_ptr.vmem [resolvable:$true] %s20_s19 }
   0x5   :  { %p354_p1 = scmp.lt.u32.totalorder %s350_s22, %s578_s0 }
   0x7   :  { %p356_p2 = pnand %p354_p1, %p351_p0 }
   0x9   :  { %359 = shalt.err (!%p356_p2)
}
   0xa   :  { %s360_s27 = scalar_lea.vmem %s21_s19, 256  ;;  %p365_p4 = scmp.lt.s32.totalorder %s21_s19, %s21_s19 }
   0xb   :  { %p361_p3 = scmp.ne.s32.totalorder %s21_s19, %s360_s27  ;;  %p366_p5 = scmp.lt.s32.totalorder %s360_s27, %s360_s27 }
   0xd   :  { %p367_p6 = por %p366_p5, %p365_p4 }
   0xf   :  { %p368_p7 = pnand %p367_p6, %p361_p3 }
  0x11   :  { %371 = shalt.err (!%p368_p7)
}
  0x12   :  { %s469_s28 = smov 128   ;;  %s470_s29 = smov 8  }
  0x13   :  { %26 = dma.hbm_to_vmem [thread:$0]  %s578_s0, 256, %s21_s19, [#allocation5], %s469_s28, %s469_s28, %s470_s29  }
  0x14   :  { %s471_s7 = smov [#allocation7]   ;;  %s372_s11 = scalar_lea.hbm %s579_s1, 2048 }
  0x15   :  { %s32_s8 = sshll.u32 %s471_s7, 4  ;;  %p373_p8 = scmp.ne.s32.totalorder %s579_s1, %s372_s11  ;;  %s33_s8 = int_to_ptr.vmem [resolvable:$true] %s32_s8 }
  0x16   :  { %p376_p9 = scmp.lt.u32.totalorder %s372_s11, %s579_s1 }
  0x18   :  { %p378_p10 = pnand %p376_p9, %p373_p8 }
  0x1a   :  { %381 = shalt.err (!%p378_p10)
}
  0x1b   :  { %s382_s16 = scalar_lea.vmem %s33_s8, 2048  ;;  %p387_p12 = scmp.lt.s32.totalorder %s33_s8, %s33_s8 }
  0x1c   :  { %p383_p11 = scmp.ne.s32.totalorder %s33_s8, %s382_s16  ;;  %p388_p13 = scmp.lt.s32.totalorder %s382_s16, %s382_s16 }
  0x1e   :  { %p389_p0 = por %p388_p13, %p387_p12 }
  0x20   :  { %p390_p1 = pnand %p389_p0, %p383_p11 }
  0x22   :  { %393 = shalt.err (!%p390_p1)
}
  0x23   :  { %38 = dma.hbm_to_vmem [thread:$0]  %s579_s1, 2048, %s33_s8, [#allocation8], %s469_s28, %s469_s28, %s470_s29  }
  0x24   :  { %460 = dma.done.wait [#allocation5], 256  }
  0x25   :  { %461 = vsyncadd [#allocation5], 4294967040 }
  0x26   :  { %462 = dma.done.wait [#allocation8], 2048  }
  0x27   :  { %463 = vsyncadd [#allocation8], 4294965248  ;;  %v55_v0 = vld [vmem:[#allocation7] sm:$0xff]  ;;  %v56_v1 = vld [vmem:[#allocation7 + $0x8] sm:$0xff]  ;;  %v472_v26 = vmov 0.0   ;;  %s473_s19 = smov [#allocation9]  }
  0x28   :  { %v57_v2 = vld [vmem:[#allocation7 + $0x10] sm:$0xff]  ;;  %v308_v3 = vpack.c.bf16 %v56_v1, %v55_v0  ;;  %v58_v4 = vld [vmem:[#allocation7 + $0x18] sm:$0xff]  ;;  %v59_v6 = vld [vmem:[#allocation7 + $0x20] sm:$0xff]  ;;  %51 = vst [vmem:[#allocation2] sm:$0x1] %v472_v26  ;;  %s214_s20 = sshll.u32 %s473_s19, 4  ;;  %s215_s20 = int_to_ptr.vmem [resolvable:$true] %s214_s20 }
  0x29   :  { %v312_v5 = vpack.c.bf16 %v58_v4, %v57_v2  ;;  %v60_v7 = vld [vmem:[#allocation7 + $0x28] sm:$0xff]  ;;  %v53_v9 = vld [vmem:[#allocation4] sm:$0xff]  ;;  %v62_v11 = vld [vmem:[#allocation7 + $0x38] sm:$0xff]  ;;  %52 = vst [vmem:[#allocation3] sm:$0x1] %v472_v26  ;;  %s394_s21 = scalar_lea.vmem %s215_s20, 256  ;;  %p399_p3 = scmp.lt.s32.totalorder %s215_s20, %s215_s20 }
  0x2a   :  { %309 = vmatprep.subr.bf16.mxu0 %v308_v3  ;;  %v316_v8 = vpack.c.bf16 %v60_v7, %v59_v6  ;;  %v61_v10 = vld [vmem:[#allocation7 + $0x30] sm:$0xff]  ;;  %305 = vmatprep.mubr.f32.mxu0 %v53_v9  ;;  %v63_v13 = vld [vmem:[#allocation7 + $0x40] sm:$0xff]  ;;  %v64_v14 = vld [vmem:[#allocation7 + $0x48] sm:$0xff]  ;;  %p395_p2 = scmp.ne.s32.totalorder %s215_s20, %s394_s21  ;;  %p400_p4 = scmp.lt.s32.totalorder %s394_s21, %s394_s21 }
  0x2b   :  { %311 = vmatpush3.bf16.msra.mxu0 %v308_v3  ;;  %v320_v12 = vpack.c.bf16 %v62_v11, %v61_v10  ;;  %v324_v15 = vpack.c.bf16 %v64_v14, %v63_v13  ;;  %v65_v16 = vld [vmem:[#allocation7 + $0x50] sm:$0xff]  ;;  %v66_v17 = vld [vmem:[#allocation7 + $0x58] sm:$0xff]  ;;  %v67_v19 = vld [vmem:[#allocation7 + $0x60] sm:$0xff] }
  0x2c   :  { %313 = vmatprep.subr.bf16.mxu0 %v312_v5  ;;  %v328_v18 = vpack.c.bf16 %v66_v17, %v65_v16  ;;  %v68_v20 = vld [vmem:[#allocation7 + $0x68] sm:$0xff]  ;;  %v69_v22 = vld [vmem:[#allocation7 + $0x70] sm:$0xff]  ;;  %v70_v23 = vld [vmem:[#allocation7 + $0x78] sm:$0xff]  ;;  %p401_p5 = por %p400_p4, %p399_p3 }
  0x2d   :  { %v332_v21 = vpack.c.bf16 %v68_v20, %v67_v19  ;;  %v336_v24 = vpack.c.bf16 %v70_v23, %v69_v22  ;;  %v54_v25 = vld [vmem:[#allocation4 + $0x8] sm:$0xff]  ;;  %v254_v27 = vld [vmem:[%s580_s2] ss:$0 sm:$0xff] }
  0x2e   :  { %p402_p6 = pnand %p401_p5, %p395_p2 }
  0x2f   :  { %315 = vmatpush3.bf16.msra.mxu0 %v312_v5 }
  0x30   :  { %317 = vmatprep.subr.bf16.mxu0 %v316_v8 }
  0x33   :  { %319 = vmatpush3.bf16.msra.mxu0 %v316_v8 }
  0x34   :  { %321 = vmatprep.subr.bf16.mxu0 %v320_v12 }
  0x37   :  { %323 = vmatpush3.bf16.msra.mxu0 %v320_v12 }
  0x38   :  { %325 = vmatprep.subr.bf16.mxu0 %v324_v15 }
  0x3b   :  { %327 = vmatpush3.bf16.msra.mxu0 %v324_v15 }
  0x3c   :  { %329 = vmatprep.subr.bf16.mxu0 %v328_v18 }
  0x3f   :  { %331 = vmatpush3.bf16.msra.mxu0 %v328_v18 }
  0x40   :  { %333 = vmatprep.subr.bf16.mxu0 %v332_v21 }
  0x43   :  { %335 = vmatpush3.bf16.msra.mxu0 %v332_v21 }
  0x44   :  { %337 = vmatprep.subr.bf16.mxu0 %v336_v24 }
  0x47   :  { %339 = vmatpush3.bf16.msra.mxu0 %v336_v24 }
  0x4a   :  { %306 = vmatmul.mubr.f32.vlgmr.msra.gmra.mrb[0].mxu0 %v54_v25 }
 0x11d   :  { %v307_v28 = vpop.f32.mrb[0].mxu0 }
 0x11e   :  { %v150_v29 = vadd.f32 %v307_v28, %v254_v27  ;;  %v144_v30 = vpop.f32.mrb[1].mxu0 }
 0x11f   :  { %v145_v31 = vadd.f32 %v254_v27, %v144_v30 }
 0x120   :  { %198 = vst [vmem:[#allocation9 + $0x8] sm:$0xff] %v150_v29 }
 0x121   :  { %v156_v32 = vadd.f32 %v150_v29, %v145_v31  ;;  %197 = vst [vmem:[#allocation9] sm:$0xff] %v145_v31 }
 0x122   :  { %405 = shalt.err (!%p402_p6)
}
 0x123   :  { %s406_s2 = scalar_lea.hbm %s581_s3, 256 }
 0x124   :  { %p407_p7 = scmp.ne.s32.totalorder %s581_s3, %s406_s2  ;;  %p410_p8 = scmp.lt.u32.totalorder %s406_s2, %s581_s3 }
 0x126   :  { %p412_p9 = pnand %p410_p8, %p407_p7 }
 0x128   :  { %415 = shalt.err (!%p412_p9)
}
 0x129   :  { %220 = dma.vmem_to_hbm [thread:$0]  %s215_s20, 256, %s581_s3, [#allocation6], %s469_s28, %s469_s28, %s470_s29   ;;  %v157_v33 = vrot.slane %v156_v32, 4  ;;  %v175_v39 = vld [vmem:[#allocation2] sm:$0x1] }
 0x12a   :  { %s474_s7 = smov [#allocation10]  }
 0x12b   :  { %v158_v34 = vadd.f32 %v157_v33, %v156_v32  ;;  %s227_s8 = sshll.u32 %s474_s7, 4  ;;  %s228_s8 = int_to_ptr.vmem [resolvable:$true] %s227_s8 }
 0x12c   :  { %s416_s3 = scalar_lea.vmem %s228_s8, 16  ;;  %s420_s28 = scalar_lea.vmem %s228_s8, 32 }
 0x12d   :  { %v159_v35 = vrot.slane %v158_v34, 2  ;;  %p417_p10 = scmp.ne.s32.totalorder %s228_s8, %s416_s3  ;;  %p421_p11 = scmp.lt.s32.totalorder %s228_s8, %s228_s8 }
 0x12e   :  { %p422_p12 = scmp.lt.s32.totalorder %s420_s28, %s416_s3 }
 0x12f   :  { %v160_v36 = vadd.f32 %v159_v35, %v158_v34 }
 0x130   :  { %p423_p13 = por %p422_p12, %p421_p11 }
 0x131   :  { %v161_v37 = vrot.slane %v160_v36, 1 }
 0x132   :  { %p424_p0 = pnand %p423_p13, %p417_p10 }
 0x133   :  { %v162_v38 = vadd.f32 %v161_v37, %v160_v36 }
 0x135   :  { %v163_v40 = vmul.f32 0.0625, %v162_v38 }
 0x137   :  { %v164_v41 = vsub.f32 %v145_v31, %v163_v40  ;;  %v165_v42 = vsub.f32 %v150_v29, %v163_v40  ;;  %v176_v43 = vsub.f32 %v163_v40, %v175_v39 }
 0x139   :  { %v166_v44 = vmul.f32 %v164_v41, %v164_v41  ;;  %v167_v45 = vmul.f32 %v165_v42, %v165_v42  ;;  %v183_v46 = vadd.f32 %v176_v43, %v175_v39 }
 0x13b   :  { %v168_v47 = vadd.f32 %v167_v45, %v166_v44  ;;  %184 = vst [vmem:[#allocation2] sm:$0x1] %v183_v46 }
 0x13d   :  { %v169_v48 = vrot.slane %v168_v47, 4 }
 0x13f   :  { %v170_v49 = vadd.f32 %v169_v48, %v168_v47 }
 0x141   :  { %v171_v50 = vrot.slane %v170_v49, 2 }
 0x142   :  { %v204_v51 = vld [vmem:[#allocation2] sm:$0x1] }
 0x143   :  { %v172_v52 = vadd.f32 %v171_v50, %v170_v49  ;;  %205 = vst [vmem:[#allocation10] sm:$0x1] %v204_v51 }
 0x144   :  { %427 = shalt.err (!%p424_p0)
}
 0x145   :  { %s428_s10 = scalar_lea.hbm %s582_s4, 16 }
 0x146   :  { %p429_p1 = scmp.ne.s32.totalorder %s582_s4, %s428_s10  ;;  %p432_p2 = scmp.lt.u32.totalorder %s428_s10, %s582_s4 }
 0x148   :  { %p434_p3 = pnand %p432_p2, %p429_p1 }
 0x14a   :  { %437 = shalt.err (!%p434_p3)
}
 0x14b   :  { %230 = dma.vmem_to_hbm [thread:$0]  %s228_s8, 16, %s582_s4, [#allocation11]   ;;  %v173_v53 = vrot.slane %v172_v52, 1  ;;  %v187_v54 = vmul.f32 %v176_v43, %v176_v43  ;;  %v185_v55 = vld [vmem:[#allocation3] sm:$0x1] }
 0x14c   :  { %s475_s0 = smov [#allocation12]  }
 0x14d   :  { %v174_v56 = vadd.f32 %v173_v53, %v172_v52  ;;  %v194_v58 = vmul.f32 0.0, %v187_v54  ;;  %s237_s17 = sshll.u32 %s475_s0, 4  ;;  %s238_s17 = int_to_ptr.vmem [resolvable:$true] %s237_s17 }
 0x14e   :  { %s438_s1 = scalar_lea.vmem %s238_s17, 16  ;;  %s442_s4 = scalar_lea.vmem %s238_s17, 32 }
 0x14f   :  { %v186_v57 = vadd.f32 %v185_v55, %v174_v56  ;;  %p439_p4 = scmp.ne.s32.totalorder %s238_s17, %s438_s1  ;;  %p443_p5 = scmp.lt.s32.totalorder %s238_s17, %s238_s17 }
 0x150   :  { %p444_p6 = scmp.lt.s32.totalorder %s442_s4, %s438_s1 }
 0x151   :  { %v195_v59 = vadd.f32 %v194_v58, %v186_v57 }
 0x152   :  { %p445_p7 = por %p444_p6, %p443_p5 }
 0x153   :  { %196 = vst [vmem:[#allocation3] sm:$0x1] %v195_v59 }
 0x154   :  { %p446_p8 = pnand %p445_p7, %p439_p4 }
 0x15a   :  { %v202_v60 = vld [vmem:[#allocation3] sm:$0x1] }
 0x15b   :  { %v203_v61 = vmul.f32 0.0625, %v202_v60 }
 0x15d   :  { %v206_v62 = vadd.f32 1e-05, %v203_v61 }
 0x15f   :  { %348 = vrsqrt.f32 %v206_v62 }
 0x169   :  { %v349_v63 = vpop.eup %348 }
 0x16a   :  { %208 = vst [vmem:[#allocation12] sm:$0x1] %v349_v63 }
 0x16b   :  { %449 = shalt.err (!%p446_p8)
}
 0x16c   :  { %s450_s20 = scalar_lea.hbm %s583_s5, 16 }
 0x16d   :  { %p451_p9 = scmp.ne.s32.totalorder %s583_s5, %s450_s20  ;;  %p454_p10 = scmp.lt.u32.totalorder %s450_s20, %s583_s5 }
 0x16f   :  { %p456_p11 = pnand %p454_p10, %p451_p9 }
 0x171   :  { %459 = shalt.err (!%p456_p11)
}
 0x172   :  { %240 = dma.vmem_to_hbm [thread:$0]  %s238_s17, 16, %s583_s5, [#allocation11]  }
 0x173   :  { %464 = dma.done.wait [#allocation6], 256  }
 0x174   :  { %465 = vsyncadd [#allocation6], 4294967040 }
 0x175   :  { %466 = dma.done.wait [#allocation11], 32  }
 0x176   :  { %467 = vsyncadd [#allocation11], 4294967264 }
 0x177   :  { %250 = vsyncpa [#allocation5], 1 }
 0x178   :  { %251 = vsyncpa [#allocation8], 1 }
 0x179   :  { %252 = vsyncpa [#allocation6], 1 }
 0x17a   :  { %253 = vsyncpa [#allocation11], 1 }

</bundles_post_ra>
